<compile_context>
chip_gen: v7x
topology: tpu7x:2x2x1
jax: 0.10.0
libtpu: 0.0.40
codegen_flags: <defaults>
</compile_context>

<pallas_src>
import functools

import jax
import jax.numpy as jnp
from jax import lax
from jax.experimental import pallas as pl
from jax.experimental.pallas import tpu as pltpu

_VMEM_CAP_BYTES = 48 << 20     # stay under v7x's 64 MiB physical VMEM with headroom
_VMEM_FLOOR_BYTES = 32 << 20   # never restrict below the largest default scoped limit


def _round_up(x, m):
    return ((x + m - 1) // m) * m


def _vmem_limit(nbytes_needed):
    return int(min(_VMEM_CAP_BYTES,
                   max(2 * nbytes_needed + (2 << 20), _VMEM_FLOOR_BYTES)))


# --------------------------------------------------------------------------
# Linear (x @ W + b): 2-D (rows, cols) grid, bf16 MXU operands, f32 accumulate.
# When the whole weight fits in one column block its index_map is constant, so
# it is kept resident and single-buffered (pl.Buffered(1)).
# --------------------------------------------------------------------------
def _linear_kernel(x_ref, w_ref, b_ref, o_ref):
    x = x_ref[...].astype(jnp.bfloat16)
    w = w_ref[...].astype(jnp.bfloat16)
    acc = jnp.dot(x, w, preferred_element_type=jnp.float32)
    acc = acc + b_ref[...].astype(jnp.float32)
    o_ref[...] = acc.astype(o_ref.dtype)


def linear(x2, w, b, *, tile_rows=256, max_tile_cols=2048):
    rows, cin = x2.shape
    cout = w.shape[1]

    # Row tiling: multiple of 8; keep >= 2 grid steps when possible (megacore).
    if rows >= 16:
        tr = min(tile_rows, _round_up(pl.cdiv(rows, 2), 8))
    else:
        tr = _round_up(rows, 8)
    tr = max(tr, 8)
    n_row = pl.cdiv(rows, tr)

    # Column tiling: full width if it fits, else largest 128-multiple divisor.
    tc = cout
    if cout > max_tile_cols:
        for cand in range(128, max_tile_cols + 1, 128):
            if cout % cand == 0:
                tc = cand
    n_col = pl.cdiv(cout, tc)

    x_spec = pl.BlockSpec((tr, cin), lambda i, j: (i, 0))
    o_spec = pl.BlockSpec((tr, tc), lambda i, j: (i, j))
    if n_col == 1:
        # Resident weight/bias: single-buffer (constant index_map).
        w_spec = pl.BlockSpec((cin, tc), lambda i, j: (0, 0),
                              pipeline_mode=pl.Buffered(1))
        b_spec = pl.BlockSpec((1, tc), lambda i, j: (0, 0),
                              pipeline_mode=pl.Buffered(1))
        w_bufs = 1
    else:
        w_spec = pl.BlockSpec((cin, tc), lambda i, j: (0, j))
        b_spec = pl.BlockSpec((1, tc), lambda i, j: (0, j))
        w_bufs = 2

    itemsize = x2.dtype.itemsize
    need = (2 * tr * cin * itemsize                  # x tiles (double buffered)
            + w_bufs * cin * tc * w.dtype.itemsize   # weight block(s)
            + w_bufs * 8 * tc * b.dtype.itemsize     # bias (sublane padded)
            + 2 * tr * tc * itemsize                 # out tiles
            + tr * tc * 4)                           # f32 acc / cast headroom

    return pl.pallas_call(
        _linear_kernel,
        out_shape=jax.ShapeDtypeStruct((rows, cout), x2.dtype),
        grid_spec=pltpu.PrefetchScalarGridSpec(
            num_scalar_prefetch=0,
            grid=(n_row, n_col),
            in_specs=[x_spec, w_spec, b_spec],
            out_specs=o_spec,
        ),
        compiler_params=pltpu.CompilerParams(
            dimension_semantics=("parallel", "parallel"),
            vmem_limit_bytes=_vmem_limit(need)),
    )(x2, w, b.reshape(1, cout))


# --------------------------------------------------------------------------
# Fused attention kernel: LN(q), LN(k) (scale pre-folded), per-head
# softmax(q k^T) v, heads merged into a lane-dense (N, g*hd) output block.
# qkv_ref is a (N, 3, g, hd) slice of the (B, N, 3, H, hd) qkv tensor.
# --------------------------------------------------------------------------
def _attn_kernel(qkv_ref, qw_ref, qb_ref, kw_ref, kb_ref, o_ref, *, eps):
    g = qkv_ref.shape[2]
    hd = qkv_ref.shape[3]

    blk = qkv_ref[...]                              # (N, 3, g, hd)
    q = blk[:, 0].astype(jnp.float32)               # (N, g, hd)
    k = blk[:, 1].astype(jnp.float32)
    v = blk[:, 2].astype(jnp.bfloat16)

    def layernorm(t, w_r, b_r):
        mu = jnp.mean(t, axis=-1, keepdims=True)
        tcen = t - mu
        var = jnp.mean(tcen * tcen, axis=-1, keepdims=True)
        inv = lax.rsqrt(var + eps)
        return tcen * inv * w_r[...].astype(jnp.float32) + b_r[...].astype(jnp.float32)

    # hd**-0.5 scale is folded into the q-norm affine params by the wrapper.
    qn = layernorm(q, qw_ref, qb_ref).astype(jnp.bfloat16)
    kn = layernorm(k, kw_ref, kb_ref).astype(jnp.bfloat16)

    for h in range(g):
        qh = qn[:, h, :]                            # (N, hd) bf16
        kh = kn[:, h, :]
        vh = v[:, h, :]
        # q @ k^T on the MXU (bf16 operands, f32 accumulate)
        s = lax.dot_general(qh, kh, (((1,), (1,)), ((), ())),
                            preferred_element_type=jnp.float32)    # (N, N)
        s = s - jnp.max(s, axis=-1, keepdims=True)
        p = jnp.exp(s)
        denom = jnp.sum(p, axis=-1, keepdims=True)
        o_h = jnp.dot(p.astype(jnp.bfloat16), vh,
                      preferred_element_type=jnp.float32)           # (N, hd)
        # normalize AFTER the PV matmul; approx reciprocal runs on the EUP slot
        o_h = o_h * pl.reciprocal(denom, approx=True)
        o_ref[:, h * hd:(h + 1) * hd] = o_h.astype(o_ref.dtype)     # merged-head layout


def _pick_head_group(B, H, hd, N, budget_bytes):
    # Candidates keep blocks layout-friendly: g == H (full dims), or
    # g % 8 == 0 with a 128-multiple merged output width.
    cands = []
    for g in range(1, H + 1):
        if H % g:
            continue
        if g != H and (g % 8 != 0 or (g * hd) % 128 != 0):
            continue
        cands.append(g)

    def cost(g):  # rough per-step working set: q/k/v + LN copies + one head's scores
        return 8 * N * g * hd * 4 + g * N * N * 4

    fitting = [g for g in cands if cost(g) <= budget_bytes]
    g = max(fitting) if fitting else min(cands)
    # megacore (v7x): prefer >= 2 grid steps when a smaller valid group exists
    if B * (H // g) < 2:
        smaller = [c for c in cands if c < g and cost(c) <= budget_bytes]
        if smaller:
            g = max(smaller)
    return g


def attention_heads(qkv5, qw, qb, kw, kb, *, out_dtype, eps,
                    score_budget_bytes=16 << 20):
    B, N, three, H, hd = qkv5.shape
    assert three == 3
    g = _pick_head_group(B, H, hd, N, score_budget_bytes)
    n_grp = H // g
    cg = g * hd

    qkv_spec = pl.BlockSpec((None, N, 3, g, hd), lambda b, j: (b, 0, 0, j, 0))
    prm_spec = pl.BlockSpec((1, hd), lambda b, j: (0, 0))
    out_spec = pl.BlockSpec((None, N, cg), lambda b, j: (b, 0, j))

    itemsize = qkv5.dtype.itemsize
    need = (2 * N * 3 * g * hd * itemsize                     # qkv block (double buffered)
            + 2 * N * cg * jnp.dtype(out_dtype).itemsize      # out block (double buffered)
            + 6 * N * g * hd * 4                              # f32/bf16 LN copies
            + 3 * N * N * 4)                                  # per-head scores / exp

    kernel = functools.partial(_attn_kernel, eps=eps)
    return pl.pallas_call(
        kernel,
        out_shape=jax.ShapeDtypeStruct((B, N, H * hd), out_dtype),
        grid_spec=pltpu.PrefetchScalarGridSpec(
            num_scalar_prefetch=0,
            grid=(B, n_grp),
            in_specs=[qkv_spec, prm_spec, prm_spec, prm_spec, prm_spec],
            out_specs=out_spec,
        ),
        compiler_params=pltpu.CompilerParams(
            dimension_semantics=("parallel", "parallel"),
            vmem_limit_bytes=_vmem_limit(need)),
    )(qkv5, qw.reshape(1, hd), qb.reshape(1, hd),
      kw.reshape(1, hd), kb.reshape(1, hd))


# --------------------------------------------------------------------------
# Full ScaledAttention forward.
# Weight convention: W stored (in_features, out_features), i.e. y = x @ W + b.
# --------------------------------------------------------------------------
def scaled_attention_forward(x, w_qkv, b_qkv, q_norm_w, q_norm_b,
                             k_norm_w, k_norm_b, w_proj, b_proj,
                             *, num_heads, eps=1e-5):
    B, N, C = x.shape
    hd = C // num_heads
    scale = hd ** (-0.5)

    # qkv projection
    qkv = linear(x.reshape(B * N, C), w_qkv, b_qkv)          # (B*N, 3C)
    # contiguous (free) reshape -- NO transpose; the attention kernel's
    # index_maps slice q/k/v head-groups out of this layout directly.
    qkv5 = qkv.reshape(B, N, 3, num_heads, hd)

    # fold the hd**-0.5 scale into the q-LayerNorm affine parameters
    qw = q_norm_w * scale
    qb = q_norm_b * scale

    # fused LN(q)/LN(k) + softmax attention; heads merged in-kernel -> (B, N, C)
    o = attention_heads(qkv5, qw, qb, k_norm_w, k_norm_b,
                        out_dtype=x.dtype, eps=eps)

    # output projection
    out = linear(o.reshape(B * N, C), w_proj, b_proj)        # (B*N, C)
    return out.reshape(B, N, C)


# --------------------------------------------------------------------------
# Pure-JAX f32 reference (mirrors the PyTorch forward exactly).
# --------------------------------------------------------------------------
def ref_forward(x, w_qkv, b_qkv, q_norm_w, q_norm_b, k_norm_w, k_norm_b,
                w_proj, b_proj, *, num_heads, eps=1e-5):
    B, N, C = x.shape
    hd = C // num_heads
    scale = hd ** (-0.5)
    qkv = x.reshape(B * N, C) @ w_qkv + b_qkv
    qkv = qkv.reshape(B, N, 3, num_heads, hd)
    qkv = jnp.transpose(qkv, (2, 0, 3, 1, 4))
    q, k, v = qkv[0], qkv[1], qkv[2]

    def ln(t, w, b):
        mu = t.mean(-1, keepdims=True)
        var = ((t - mu) ** 2).mean(-1, keepdims=True)
        return (t - mu) / jnp.sqrt(var + eps) * w + b

    q = ln(q, q_norm_w, q_norm_b) * scale
    k = ln(k, k_norm_w, k_norm_b)
    attn = jnp.einsum('bhqd,bhkd->bhqk', q, k)
    attn = jax.nn.softmax(attn, axis=-1)
    o = jnp.einsum('bhqk,bhkd->bhqd', attn, v)
    o = jnp.transpose(o, (0, 2, 1, 3)).reshape(B * N, C)
    return (o @ w_proj + b_proj).reshape(B, N, C)


if __name__ == "__main__":
    key = jax.random.PRNGKey(0)

    # Small shapes consistent with the module: dim divisible by num_heads.
    B, N, C = 2, 16, 64
    num_heads = 4
    hd = C // num_heads
    eps = 1e-5

    ks = jax.random.split(key, 8)
    x = jax.random.normal(ks[0], (B, N, C), dtype=jnp.float32)
    w_qkv = jax.random.normal(ks[1], (C, 3 * C), dtype=jnp.float32) * 0.05
    b_qkv = jnp.zeros((3 * C,), dtype=jnp.float32)          # qkv_bias=False
    q_norm_w = 1.0 + 0.1 * jax.random.normal(ks[2], (hd,), dtype=jnp.float32)
    q_norm_b = 0.1 * jax.random.normal(ks[3], (hd,), dtype=jnp.float32)
    k_norm_w = 1.0 + 0.1 * jax.random.normal(ks[4], (hd,), dtype=jnp.float32)
    k_norm_b = 0.1 * jax.random.normal(ks[5], (hd,), dtype=jnp.float32)
    w_proj = jax.random.normal(ks[6], (C, C), dtype=jnp.float32) * 0.05
    b_proj = jax.random.normal(ks[7], (C,), dtype=jnp.float32) * 0.05

    out = scaled_attention_forward(
        x, w_qkv, b_qkv, q_norm_w, q_norm_b, k_norm_w, k_norm_b,
        w_proj, b_proj, num_heads=num_heads, eps=eps)
    out = jax.block_until_ready(out)

    ref = ref_forward(
        x, w_qkv, b_qkv, q_norm_w, q_norm_b, k_norm_w, k_norm_b,
        w_proj, b_proj, num_heads=num_heads, eps=eps)

    assert out.shape == (B, N, C)
    # Tolerance loosened: kernels feed the MXU bf16 operands (f32 accumulation),
    # the reference is pure f32.
    assert jnp.allclose(out, ref, atol=5e-2, rtol=5e-2), float(
        jnp.max(jnp.abs(out - ref)))

    print("KERNEL_OK")
</pallas_src>

<mosaic_0001>
module attributes {stable_mosaic.version = 11 : i64} {
  func.func @_linear_kernel(%arg0: i32, %arg1: i32, %arg2: memref<16x64xf32, #tpu.memory_space<vmem>>, %arg3: memref<64x192xf32, #tpu.memory_space<vmem>>, %arg4: memref<1x192xf32, #tpu.memory_space<vmem>>, %arg5: memref<16x192xf32, #tpu.memory_space<vmem>>) attributes {dimension_semantics = [#tpu.dimension_semantics<parallel>, #tpu.dimension_semantics<parallel>], iteration_bounds = array<i64: 2, 1>, scalar_prefetch = 0 : i64, scratch_operands = 0 : i64, tpu.core_type = #tpu.core_type<tc>, window_params = [{transform_indices = @transform_0, window_bounds = array<i64: 16, 64>}, {pipeline_mode = #tpu.pipeline_mode<synchronous>, transform_indices = @transform_1, window_bounds = array<i64: 64, 192>}, {pipeline_mode = #tpu.pipeline_mode<synchronous>, transform_indices = @transform_2, window_bounds = array<i64: 1, 192>}, {transform_indices = @transform_3, window_bounds = array<i64: 16, 192>}]} {
    %c0 = arith.constant 0 : index
    %c0_0 = arith.constant 0 : index
    %0 = vector.load %arg2[%c0, %c0_0] : memref<16x64xf32, #tpu.memory_space<vmem>>, vector<16x64xf32>
    %1 = arith.truncf %0 : vector<16x64xf32> to vector<16x64xbf16>
    %c0_1 = arith.constant 0 : index
    %c0_2 = arith.constant 0 : index
    %2 = vector.load %arg3[%c0_1, %c0_2] : memref<64x192xf32, #tpu.memory_space<vmem>>, vector<64x192xf32>
    %3 = arith.truncf %2 : vector<64x192xf32> to vector<64x192xbf16>
    %cst = arith.constant dense<0.000000e+00> : vector<16x192xf32>
    %4 = tpu.matmul %1, %3, %cst {dimension_numbers = #tpu.dot_dimension_numbers<[1], [0], [0], [1], [0, 0, 1, 1], [], []>} : vector<16x64xbf16>, vector<64x192xbf16>, vector<16x192xf32> -> vector<16x192xf32>
    %c0_3 = arith.constant 0 : index
    %c0_4 = arith.constant 0 : index
    %5 = vector.load %arg4[%c0_3, %c0_4] : memref<1x192xf32, #tpu.memory_space<vmem>>, vector<1x192xf32>
    %6 = vector.broadcast %5 : vector<1x192xf32> to vector<16x192xf32>
    %7 = arith.addf %4, %6 : vector<16x192xf32>
    %c0_5 = arith.constant 0 : index
    %c0_6 = arith.constant 0 : index
    %8 = vector.load %arg5[%c0_5, %c0_6] : memref<16x192xf32, #tpu.memory_space<vmem>>, vector<16x192xf32>
    tpu.vector_store %arg5[%c0_5, %c0_6], %7 {strides = array<i32>} : memref<16x192xf32, #tpu.memory_space<vmem>>, vector<16x192xf32>,
    return
  }
  func.func @transform_0(%arg0: i32, %arg1: i32) -> (i32, i32) {
    %c0_i32 = arith.constant 0 : i32
    %c0_i32_0 = arith.constant 0 : i32
    return %arg0, %c0_i32 : i32, i32
  }
  func.func @transform_1(%arg0: i32, %arg1: i32) -> (i32, i32) {
    %c0_i32 = arith.constant 0 : i32
    %c0_i32_0 = arith.constant 0 : i32
    %c0_i32_1 = arith.constant 0 : i32
    return %c0_i32, %c0_i32_0 : i32, i32
  }
  func.func @transform_2(%arg0: i32, %arg1: i32) -> (i32, i32) {
    %c0_i32 = arith.constant 0 : i32
    %c0_i32_0 = arith.constant 0 : i32
    %c0_i32_1 = arith.constant 0 : i32
    return %c0_i32, %c0_i32_0 : i32, i32
  }
  func.func @transform_3(%arg0: i32, %arg1: i32) -> (i32, i32) {
    %c0_i32 = arith.constant 0 : i32
    return %arg0, %arg1 : i32, i32
  }
}

</mosaic_0001>

<bundles_post_ra>
// kernel: tpu_custom_call.1
= control target key start
LH: loop header
LB: loop body
LE: loop exit
PB: predicated region body
PF: predicated region fallthrough
CT: control target
= control target key end

     0   :  { %8 = vsyncpa [#allocation3], 0  ;;  %s931_s0 = inlined_call_operand.hbm [shape: f32[32,64], index: 0, kind: input, shape index: {}]   ;;  %s932_s1 = inlined_call_operand.hbm [shape: f32[64,192], index: 1, kind: input, shape index: {}]   ;;  %s933_s2 = inlined_call_operand.vmem [shape: f32[1,192], index: 2, kind: input, shape index: {}]   ;;  %s934_s3 = inlined_call_operand.hbm [shape: f32[32,192], index: 3, kind: output, shape index: {}]  }
   0x1   :  { %10 = vsyncpa [#allocation3 + $0x1], 0 }
   0x2   :  { %11 = vsyncpa [#allocation6], 0 }
   0x3   :  { %12 = vsyncpa [#allocation4], 0 }
   0x4   :  { %14 = vsyncpa [#allocation4 + $0x1], 0  ;;  %s701_s12 = smov 0   ;;  %s703_s13 = smov 0  }
   0x5   :  { %s705_s14 = smov 0   ;;  %s707_s15 = smov 0  }
   0x6   :  { %s709_s16 = smov 0   ;;  %s711_s17 = smov 0  }
   0x7 LB: > { %s423_s18 = sadd.s32 4294967295, %s669_s17   ;;  %s424_s19 = sadd.s32 4294967294, %s669_s17   ;;  %s669_s17 = sphi %s711_s17, %s20_s17   ;;  %s665_s16 = sphi %s709_s16, %s958_s16   ;;  %s661_s15 = sphi %s707_s15, %s957_s15   ;;  %s657_s14 = sphi %s705_s14, %s956_s14   ;;  %s653_s13 = sphi %s703_s13, %s955_s13   ;;  %s649_s12 = sphi %s701_s12, %s954_s12  }
   0x8   : > { %p52_p0 = scmp.ne.s32.totalorder %s653_s13, %s649_s12  ;;  %p735_p1 = scmp.eq.s32.totalorder %s423_s18, 0 }
   0x9   : > { %p739_p2 = scmp.eq.s32.totalorder %s423_s18, 1  ;;  %p126_p3 = scmp.eq.s32.totalorder %s424_s19, 1 }
   0xa   : > { %s939_s20 = scalar_select %p735_p1, 1, 0 }
   0xb   : > { %s940_s21 = scalar_select %p739_p2, 1, 0 }
   0xc   : > { %p745_p4 = por %p735_p1, %p52_p0  ;;  %p425_p5 = scmp.ge.s32.totalorder %s669_s17, 1 }
   0xd   : > { %p750_p6 = por %p126_p3, %p52_p0  ;;  %p133_p7 = scmp.lt.s32.totalorder %s669_s17, 3 }
   0xe   : > { %s941_s22 = scalar_select %p745_p4, 1, 0 }
   0xf   : > { %s942_s23 = scalar_select %p750_p6, 1, 0 }
  0x10   : > { %p755_p8 = pnand %p425_p5, %p133_p7  ;;  %s671_s25 = smov [#allocation5]  }
  0x11   : > { %s145_s26 = sshll.u32 %s671_s25, 4  ;;  %s32_s28 = sadd.s32 1, %s665_s16  ;;  %s146_s26 = int_to_ptr.vmem [resolvable:$true] %s145_s26 }
  0x12   : > { %s943_s24 = scalar_select %p755_p8, 1, 0 }
  0x13   : > { %p453_p9 = pneg %p755_p8  ;;  %s525_s4 = scalar_lea.hbm %s932_s1, 2048 }
  0x14   : > { %p526_p12 = scmp.ne.s32.totalorder %s932_s1, %s525_s4  ;;  %p532_p5 = scmp.lt.u32.totalorder %s525_s4, %s932_s1 }
  0x15   : > { %p764_p11 = pnand %p453_p9, %p735_p1 }
  0x17   : > { %p527_p13 = pneg %p764_p11 }
  0x19   : > { %p528_p0 = pnand %p527_p13, %p526_p12 }
  0x1b   : > { %p529_p3 = pneg %p528_p0 }
  0x1d   : > { %p534_p7 = pnand %p532_p5, %p529_p3 }
  0x1f   : > { %537 = shalt.err (!%p534_p7)
}
  0x20   : > { %s538_s9 = scalar_lea.vmem %s146_s26, 2048  ;;  %p546_p1 = scmp.lt.s32.totalorder %s146_s26, %s146_s26 }
  0x21   : > { %p539_p9 = scmp.ne.s32.totalorder %s146_s26, %s538_s9  ;;  %p547_p4 = scmp.lt.s32.totalorder %s538_s9, %s538_s9 }
  0x23   : > { %p541_p10 = pnand %p539_p9, %p527_p13  ;;  %p548_p8 = por %p547_p4, %p546_p1 }
  0x25   : > { %p542_p6 = pneg %p541_p10 }
  0x27   : > { %p549_p2 = pnand %p548_p8, %p542_p6 }
  0x29   : > { %552 = shalt.err (!%p549_p2)
}
  0x2a   : > { %s672_s10 = smov 256   ;;  %s673_s11 = smov 16  }
  0x2b   : > { %456 = dma.hbm_to_vmem [thread:$0]  (!%p764_p11), %s932_s1, 2048, %s146_s26, [#allocation6], %s672_s10, %s672_s10, %s673_s11  }
  0x2c   : > { %p34_p1 = scmp.ge.s32.totalorder %s32_s28, 2  ;;  %s39_s25 = sadd.s32 1, %s657_s14 }
  0x2d   : > { %p46_p2 = scmp.ne.s32.totalorder %s657_s14, %s653_s13  ;;  %p47_p4 = scmp.eq.s32.totalorder %s669_s17, 0 }
  0x2e   : > { %s960_s28 = smov (%p34_p1, %s32_s28), 0  ;;  %p946_p8 = scmp.ne.s32.totalorder %s940_s21, 0 }
  0x2f   : > { %p791_p6 = por %p47_p4, %p46_p2  ;;  %s36_s27 = ssub.s32 %s665_s16, %s960_s28 }
  0x30   : > { %p797_p10 = por %p946_p8, %p46_p2  ;;  %p466_p12 = scmp.lt.s32.totalorder %s669_s17, 2 }
  0x31   : > { %p37_p11 = scmp.eq.s32.totalorder %s36_s27, 0  ;;  %s162_s26 = sand.u32 1, %s657_s14  }
  0x32   : > { %s428_s4 = sshll.u32 %s162_s26, 4  ;;  %s442_s6 = sshll.u32 %s665_s16, 8 }
  0x33   : > { %s806_s5 = scalar_select %p37_p11, %s657_s14, %s39_s25  }
  0x34   : > { %s812_s9 = scalar_lea.hbm %s931_s0, %s442_s6  ;;  %s166_s21 = scalar_lea.vmem [#allocation2], %s428_s4 }
  0x35   : > { %s173_s10 = sshll.u32 %s166_s21, 4  ;;  %p818_p13 = pnand %p466_p12, %p791_p6  ;;  %s814_s10 = int_to_ptr.vmem [resolvable:$true] %s173_s10 }
  0x36   : > { %s822_s18 = scalar_lea.sflag [#allocation3], %s162_s26  ;;  %s553_s19 = scalar_lea.hbm %s812_s9, 256 }
  0x37   : > { %p554_p0 = scmp.ne.s32.totalorder %s812_s9, %s553_s19  ;;  %p555_p3 = pneg %p818_p13 }
  0x38   : > { %s558_s29 = scalar_lea.hbm %s931_s0, 512  ;;  %p559_p9 = scmp.lt.u32.totalorder %s812_s9, %s931_s0 }
  0x39   : > { %p556_p5 = pnand %p555_p3, %p554_p0  ;;  %p560_p1 = scmp.lt.u32.totalorder %s558_s29, %s553_s19 }
  0x3a   : > { %p562_p4 = scmp.lt.u32.totalorder %s553_s19, %s812_s9 }
  0x3b   : > { %p557_p7 = pneg %p556_p5  ;;  %p561_p2 = por %p560_p1, %p559_p9 }
  0x3d   : > { %p563_p6 = por %p562_p4, %p561_p2 }
  0x3f   : > { %p564_p8 = pnand %p563_p6, %p557_p7 }
  0x41   : > { %567 = shalt.err (!%p564_p8)
}
  0x42   : > { %s568_s26 = scalar_lea.vmem %s814_s10, 256  ;;  %s674_s7 = smov [#allocation2]  }
  0x43   : > { %p569_p12 = scmp.ne.s32.totalorder %s814_s10, %s568_s26  ;;  %s573_s8 = sshll.u32 %s674_s7, 4  ;;  %s574_s8 = int_to_ptr.vmem [resolvable:$false] %s573_s8 }
  0x44   : > { %s575_s21 = scalar_lea.vmem %s574_s8, 512  ;;  %p576_p5 = scmp.lt.s32.totalorder %s814_s10, %s574_s8 }
  0x45   : > { %p571_p11 = pnand %p569_p12, %p555_p3  ;;  %p577_p9 = scmp.lt.s32.totalorder %s575_s21, %s568_s26 }
  0x47   : > { %p572_p0 = pneg %p571_p11  ;;  %p578_p1 = por %p577_p9, %p576_p5 }
  0x49   : > { %p579_p2 = pnand %p578_p1, %p572_p0 }
  0x4b   : > { %582 = shalt.err (!%p579_p2)
}
  0x4c   : > { %s675_s19 = smov 128   ;;  %s676_s25 = smov 8  }
  0x4d   : > { %460 = dma.hbm_to_vmem [thread:$0]  (!%p818_p13), %s812_s9, 256, %s814_s10, %s822_s18, %s675_s19, %s675_s19, %s676_s25  }
  0x4e   : > { %p949_p3 = scmp.ne.s32.totalorder %s943_s24, 0 }
  0x4f   : > { %s853_s27 = sand.u32 (!%p949_p3), 1, %s653_s13   ;;  %p950_p7 = scmp.ne.s32.totalorder (!%p949_p3), %s941_s22, 0 }
  0x50   : > { %185 = sbr.rel (%p949_p3) target bundleno = 342 (0x156), region = 32  ;;  %s432_s29 = sshll.u32 (!%p949_p3), %s853_s27, 4 }
  0x51   : > { %s188_s4 = scalar_lea.sflag (!%p949_p3), [#allocation3], %s853_s27  ;;  %s857_s6 = scalar_lea.vmem (!%p949_p3), [#allocation2], %s432_s29 }
  0x57   : > { %636 = dma.done.wait (%p950_p7), %s188_s4, 256  }
  0x58   : > { %638 = vsyncadd (%p950_p7), %s188_s4, 4294967040  ;;  %p951_p13 = scmp.ne.s32.totalorder %s939_s20, 0 }
  0x5a   : > { %640 = dma.done.wait (%p951_p13), [#allocation6], 2048  }
  0x5b   : > { %642 = vsyncadd (%p951_p13), [#allocation6], 4294965248  ;;  %v677_v0 = vmov 0   ;;  %v226_v1 = vld [vmem:[#allocation5 + $0x8] sm:$0xff]  ;;  %v228_v2 = vld [vmem:[#allocation5 + $0x18] sm:$0xff]  ;;  %vm261_vm0 = vcmask 523264   ;;  %v251_v28 = vlaneseq }
  0x5c   : > { %297 = vmatprep.mubr.bf16.mxu0 %v677_v0  ;;  %v225_v3 = vld [vmem:[#allocation5] sm:$0xff]  ;;  %v242_v4 = vpack.c.bf16 %v228_v2, %v226_v1  ;;  %v227_v5 = vld [vmem:[#allocation5 + $0x10] sm:$0xff]  ;;  %v230_v6 = vld [vmem:[#allocation5 + $0x28] sm:$0xff]  ;;  %s434_s24 = sshll.u32 %s853_s27, 5  ;;  %s444_s11 = sshll.u32 %s661_s15, 9 }
  0x5d   : > { %v232_v7 = vld [vmem:[#allocation5 + $0x38] sm:$0xff]  ;;  %v241_v8 = vpack.c.bf16 %v227_v5, %v225_v3  ;;  %v229_v10 = vld [vmem:[#allocation5 + $0x20] sm:$0xff]  ;;  %v231_v11 = vld [vmem:[#allocation5 + $0x30] sm:$0xff]  ;;  %v252_v29 = vshrl.u32 %v251_v28, 7  ;;  %s217_s9 = scalar_lea.vmem [#allocation7], %s434_s24  ;;  %s880_s7 = scalar_lea.hbm %s934_s3, %s444_s11 }
  0x5e   : > { %v244_v9 = vpack.c.bf16 %v232_v7, %v230_v6  ;;  %v234_v12 = vld [vmem:[#allocation5 + $0x48] sm:$0xff]  ;;  %265 = vmatprep.subr.bf16.mxu0 %v242_v4  ;;  %v236_v13 = vld [vmem:[#allocation5 + $0x58] sm:$0xff]  ;;  %v243_v14 = vpack.c.bf16 %v231_v11, %v229_v10  ;;  %v233_v16 = vld [vmem:[#allocation5 + $0x40] sm:$0xff]  ;;  %s329_s10 = sshll.u32 %s217_s9, 4  ;;  %s313_s15 = scalar_lea.sflag [#allocation4], %s853_s27  ;;  %s875_s10 = int_to_ptr.vmem [resolvable:$true] %s329_s10 }
  0x5f   : > { %266 = vmatpush1.bf16.msra.mxu0 %v241_v8  ;;  %v246_v15 = vpack.c.bf16 %v236_v13, %v234_v12  ;;  %v235_v17 = vld [vmem:[#allocation5 + $0x50] sm:$0xff]  ;;  %v238_v18 = vld [vmem:[#allocation5 + $0x68] sm:$0xff]  ;;  %v240_v19 = vld [vmem:[#allocation5 + $0x78] sm:$0xff]  ;;  %v253_v30 = vsub.s32 0, %v252_v29  ;;  %v257_v32 = vsub.s32 1, %v252_v29  ;;  %s583_s8 = scalar_lea.vmem %s875_s10, 512 }
  0x60   : > { %267 = vmatprep.subr.bf16.mxu0 %v244_v9  ;;  %v245_v20 = vpack.c.bf16 %v235_v17, %v233_v16  ;;  %v248_v21 = vpack.c.bf16 %v240_v19, %v238_v18  ;;  %v237_v22 = vld [vmem:[#allocation5 + $0x60] sm:$0xff]  ;;  %v239_v23 = vld [vmem:[#allocation5 + $0x70] sm:$0xff]  ;;  %v223_v26 = vld [vmem:[%s857_s6 + $0x8] sm:$0xff]  ;;  %p584_p4 = scmp.ne.s32.totalorder %s875_s10, %s583_s8  ;;  %s678_s21 = smov [#allocation7]  }
  0x61   : > { %v247_v24 = vpack.c.bf16 %v239_v23, %v237_v22  ;;  %v222_v25 = vld [vmem:[%s857_s6] sm:$0xff]  ;;  %s587_s19 = sshll.u32 %s678_s21, 4  ;;  %s588_s19 = int_to_ptr.vmem [resolvable:$false] %s587_s19 }
  0x62   : > { %v224_v27 = vpack.c.bf16 %v223_v26, %v222_v25  ;;  %v249_v31 = vld [vmem:[%s933_s2] sm:$0x3]  ;;  %p585_p6 = pnand %p584_p4, %p797_p10  ;;  %s589_s25 = scalar_lea.vmem %s588_s19, 1024 }
  0x63   : > { %268 = vmatpush1.bf16.msra.mxu0 %v243_v14  ;;  %v254_v33 = vrot.slane %v249_v31, %v253_v30  ;;  %v258_v34 = vrot.slane %v249_v31, %v257_v32  ;;  %p590_p12 = scmp.lt.s32.totalorder %s875_s10, %s588_s19  ;;  %p591_p11 = scmp.lt.s32.totalorder %s589_s25, %s583_s8 }
  0x64   : > { %269 = vmatprep.subr.bf16.mxu0 %v246_v15  ;;  %p586_p8 = pneg %p585_p6 }
  0x65   : > { %p592_p0 = por %p591_p11, %p590_p12 }
  0x67   : > { %270 = vmatpush1.bf16.msra.mxu0 %v245_v20  ;;  %p593_p5 = pnand %p592_p0, %p586_p8 }
  0x68   : > { %271 = vmatprep.subr.bf16.mxu0 %v248_v21 }
  0x6b   : > { %272 = vmatpush1.bf16.msra.mxu0 %v247_v24 }
  0x6e   : > { %435 = vmatmul.mubr.msk.bf16.vlgmr.msra.gmra.mrb[0].mxu0 %vm261_vm0, %v224_v27 }
 0x141   : > { %v299_v35 = vpop.f32.mrb[0].mxu0 }
 0x142   : > { %v300_v36 = vadd.f32 %v299_v35, %v254_v33  ;;  %v301_v37 = vpop.f32.mrb[1].mxu0 }
 0x143   : > { %v302_v38 = vadd.f32 %v301_v37, %v258_v34  ;;  %v303_v39 = vpop.f32.mrb[2].mxu0 }
 0x144   : > { %308 = vst [vmem:[%s217_s9] sm:$0xff] %v300_v36  ;;  %v304_v40 = vadd.f32 %v303_v39, %v254_v33  ;;  %v305_v41 = vpop.f32.mrb[3].mxu0 }
 0x145   : > { %309 = vst.msk [vmem:[%s217_s9 + $0x8] sm:$0xff] %vm261_vm0, %v302_v38  ;;  %v306_v42 = vadd.f32 %v305_v41, %v258_v34 }
 0x146   : > { %310 = vst [vmem:[%s217_s9 + $0x10] sm:$0xff] %v304_v40 }
 0x147   : > { %311 = vst.msk [vmem:[%s217_s9 + $0x18] sm:$0xff] %vm261_vm0, %v306_v42 }
 0x148   : > { %596 = shalt.err (!%p593_p5)
}
 0x149   : > { %s597_s29 = scalar_lea.hbm %s880_s7, 512  ;;  %s601_s20 = scalar_lea.hbm %s934_s3, 1024 }
 0x14a   : > { %p598_p9 = scmp.ne.s32.totalorder %s880_s7, %s597_s29  ;;  %p602_p3 = scmp.lt.u32.totalorder %s880_s7, %s934_s3 }
 0x14b   : > { %p603_p7 = scmp.lt.u32.totalorder %s601_s20, %s597_s29  ;;  %p605_p4 = scmp.lt.u32.totalorder %s597_s29, %s880_s7 }
 0x14c   : > { %p599_p1 = pnand %p598_p9, %p797_p10 }
 0x14d   : > { %p604_p13 = por %p603_p7, %p602_p3 }
 0x14e   : > { %p600_p2 = pneg %p599_p1 }
 0x14f   : > { %p606_p6 = por %p605_p4, %p604_p13 }
 0x151   : > { %p607_p8 = pnand %p606_p6, %p600_p2 }
 0x153   : > { %610 = shalt.err (!%p607_p8)
}
 0x154   : > { %s679_s9 = smov 256   ;;  %s680_s11 = smov 16  }
 0x155   : > { %451 = dma.vmem_to_hbm [thread:$0]  (%p797_p10), %s875_s10, 512, %s880_s7, %s313_s15, %s679_s9, %s679_s9, %s680_s11  }
 0x156 PF: > { %s344_s18 = sand.u32 1, %s649_s12   ;;  %p952_p12 = scmp.ne.s32.totalorder %s942_s23, 0 }
 0x157   : > { %p953_p11 = scmp.ge.s32.totalorder %s669_s17, 2  ;;  %s345_s26 = scalar_lea.sflag [#allocation4], %s344_s18 }
 0x159   : > { %p462_p0 = pnand %p953_p11, %p952_p12 }
 0x15b   : > { %644 = dma.done.wait (!%p462_p0), %s345_s26, 512  }
 0x15c   : > { %646 = vsyncadd (!%p462_p0), %s345_s26, 4294966784  ;;  %s20_s17 = sadd.s32 1, %s669_s17   ;;  %s954_s12 = smov %s653_s13 }
 0x15d   : > { %p17_p5 = scmp.ge.s32.totalorder %s20_s17, 4   ;;  %s955_s13 = smov %s657_s14 }
 0x15e   : > { %s956_s14 = smov %s806_s5  ;;  %s957_s15 = smov %s665_s16 }
 0x15f   : > { %s958_s16 = smov %s960_s28  ;;  %19 = sbr.rel (!%p17_p5) target bundleno = 7 (0x7), region = 81 }
 0x166   :  { %350 = vsyncpa [#allocation3], 1 }
 0x167   :  { %352 = vsyncpa [#allocation3 + $0x1], 1 }
 0x168   :  { %353 = vsyncpa [#allocation6], 1 }
 0x169   :  { %354 = vsyncpa [#allocation4], 1 }
 0x16a   :  { %356 = vsyncpa [#allocation4 + $0x1], 1 }

</bundles_post_ra>
